<compile_context>
chip_gen: v7x
topology: tpu7x:2x2x1
jax: 0.10.0
libtpu: 0.0.40
codegen_flags: <defaults>
</compile_context>

<pallas_src>
import functools

import jax
import jax.numpy as jnp
from jax import lax
from jax.experimental import pallas as pl
from jax.experimental.pallas import tpu as pltpu


def _lstm_chunk_kernel(x_ref, wx_ref, const_ref, w_hh_ref, out_ref, cn_ref,
                       h_sc, c_sc, *, seq_len):
    """One grid step = T timesteps of the LSTM recurrence.

    Gate blocks are pre-permuted to [i, f, o, g] (PyTorch order is [i, f, g, o]).

    x_ref    : (T, B, 1)  raw scalar EEG feature stream for this chunk
    wx_ref   : (1, 4H)    W_ih[:, 0]  (resident; weight column of the x feature)
    const_ref: (B, 4H)    emb @ W_ih[:,1:]^T + b_ih + b_hh (resident, time-invariant)
    w_hh_ref : (H, 4H)    W_hh^T (resident; f32 or bf16)
    out_ref  : (T, B, H)  hidden-state sequence slab for this chunk
    cn_ref   : (B, H)     final cell state (resident output block)
    h_sc/c_sc: (B, H)     f32 VMEM carries across chunks
    """
    chunk = pl.program_id(0)
    T = out_ref.shape[0]
    H = h_sc.shape[-1]

    @pl.when(chunk == 0)
    def _():
        h_sc[...] = jnp.zeros_like(h_sc)
        c_sc[...] = jnp.zeros_like(c_sc)

    # Hoist all resident operands out of the serial time loop.
    w_hh = w_hh_ref[...]
    w_x = wx_ref[...]
    const = const_ref[...]

    needs_mask = (seq_len % T) != 0      # static: true only when S was padded

    def step(t, carry):
        h, c = carry
        # Input path: resident constant + scalar-feature outer product (VPU only);
        # recurrent term h @ W_hh^T on the MXU with f32 accumulation.
        gates = (const + x_ref[t] * w_x
                 + jnp.dot(h.astype(w_hh.dtype), w_hh,
                           preferred_element_type=jnp.float32))
        sg = jax.nn.sigmoid(gates[:, :3 * H])      # [i, f, o] in one EUP pass
        i_g = sg[:, 0:H]
        f_g = sg[:, H:2 * H]
        o_g = sg[:, 2 * H:3 * H]
        g_g = jnp.tanh(gates[:, 3 * H:])
        c_new = f_g * c + i_g * g_g
        h_new = o_g * jnp.tanh(c_new)
        if needs_mask:
            # Padded timesteps (global index >= seq_len) must not advance h/c.
            m = ((chunk * T + t) < seq_len).astype(jnp.float32)
            c_new = m * c_new + (1.0 - m) * c
            h_new = m * h_new + (1.0 - m) * h
        out_ref[t] = h_new.astype(out_ref.dtype)
        return h_new, c_new

    # TODO(synk): hold W_hh^T stationary in the MXU across the chunk via
    # pltpu.matmul_push_rhs / matmul_acc_lhs / matmul_pop to take the weight
    # re-push off the serial dependence chain at production H.
    h_f, c_f = lax.fori_loop(0, T, step, (h_sc[...], c_sc[...]),
                             unroll=min(T, 8))
    h_sc[...] = h_f
    c_sc[...] = c_f
    # Written every chunk (tiny VMEM store); the resident output block is
    # flushed to HBM once at grid end, so the last chunk's value wins.
    cn_ref[...] = c_f.astype(cn_ref.dtype)


def _block_vmem_bytes(shape, itemsize):
    """Conservative VMEM footprint of a block: pad last two dims to (8, 128)."""
    shape = (1,) * max(0, 2 - len(shape)) + tuple(int(d) for d in shape)
    lead = 1
    for d in shape[:-2]:
        lead *= d
    sub = -(-shape[-2] // 8) * 8
    lane = -(-shape[-1] // 128) * 128
    return lead * sub * lane * itemsize


def _pick_time_chunk(S, B, H, w_hh_itemsize, vmem_limit_bytes):
    """VMEM-budget-driven chunk length (timesteps per grid step)."""
    G = 4 * H
    budget = (vmem_limit_bytes * 3) // 4          # headroom for Mosaic scratch
    resident = 2 * (_block_vmem_bytes((H, G), w_hh_itemsize)   # W_hh^T
                    + _block_vmem_bytes((B, G), 4)             # const projection
                    + _block_vmem_bytes((1, G), 4)             # w_x
                    + _block_vmem_bytes((B, H), 4))            # c_n block
    resident += 2 * _block_vmem_bytes((B, H), 4)               # h/c carries
    per_t = 2 * (_block_vmem_bytes((B, 1), 4)     # double-buffered x slab row
                 + _block_vmem_bytes((B, H), 4))  # double-buffered out slab row
    t_max = max(1, (budget - resident) // per_t)
    T = int(min(S, t_max, 512))
    if T >= S:
        return S
    if T >= 8:
        return (T // 8) * 8
    return T


def lstm_pallas(x, const_proj, w_x_col, w_hh_t, *, time_chunk=None,
                vmem_limit_bytes=48 * 1024 * 1024):
    """Single-layer LSTM recurrence with the input projection pre-reduced.

    x         : (S, B, 1) scalar EEG feature stream
    const_proj: (B, 4H)   time-invariant gate pre-activation (emb proj + biases)
    w_x_col   : (1, 4H)   input-weight column for the scalar x feature
    w_hh_t    : (H, 4H)   recurrent weights, transposed (f32 or bf16)
    Gate blocks of all of the above are ordered [i, f, o, g].
    Returns (out_seq:(S,B,H) f32, h_n:(1,B,H), c_n:(1,B,H)).
    """
    S, B, _ = x.shape
    H = w_hh_t.shape[0]
    G = 4 * H

    x = jnp.asarray(x, jnp.float32)
    const_proj = jnp.asarray(const_proj, jnp.float32)
    w_x_col = jnp.asarray(w_x_col, jnp.float32)

    T = _pick_time_chunk(S, B, H, w_hh_t.dtype.itemsize, vmem_limit_bytes)
    if time_chunk is not None:
        T = max(1, min(int(time_chunk), S))
    n_chunks = (S + T - 1) // T
    S_pad = n_chunks * T
    if S_pad != S:
        # Pad the tail (and mask inside the kernel) rather than shrinking T.
        x = jnp.concatenate([x, jnp.zeros((S_pad - S, B, 1), x.dtype)], axis=0)

    grid_spec = pltpu.PrefetchScalarGridSpec(
        num_scalar_prefetch=0,
        grid=(n_chunks,),
        in_specs=[
            pl.BlockSpec((T, B, 1), lambda c: (c, 0, 0)),    # streamed x chunk
            # TODO(synk): use pipeline_mode=pl.Buffered(1) on the three
            # resident operands below once verified, to drop their second
            # pipeline buffer at production H.
            pl.BlockSpec((1, G), lambda c: (0, 0)),          # w_x (resident)
            pl.BlockSpec((B, G), lambda c: (0, 0)),          # const (resident)
            pl.BlockSpec((H, G), lambda c: (0, 0)),          # W_hh^T (resident)
        ],
        out_specs=[
            pl.BlockSpec((T, B, H), lambda c: (c, 0, 0)),    # out slab / chunk
            pl.BlockSpec((B, H), lambda c: (0, 0)),          # c_n (resident)
        ],
        scratch_shapes=[
            pltpu.VMEM((B, H), jnp.float32),    # h carry across chunks
            pltpu.VMEM((B, H), jnp.float32),    # c carry across chunks
        ],
    )

    # TODO(synk): on v7x, add a leading parallel batch grid axis (own h/c
    # scratch per shard) to use the second TensorCore; TODO(synk): lane-dense
    # (T, B*H) output layout when H % 128 != 0.
    out_seq_pad, c_last = pl.pallas_call(
        functools.partial(_lstm_chunk_kernel, seq_len=S),
        out_shape=(jax.ShapeDtypeStruct((S_pad, B, H), jnp.float32),
                   jax.ShapeDtypeStruct((B, H), jnp.float32)),
        grid_spec=grid_spec,
        compiler_params=pltpu.CompilerParams(
            dimension_semantics=("arbitrary",),
            vmem_limit_bytes=vmem_limit_bytes),
    )(x, w_x_col, const_proj, w_hh_t)

    out_seq = out_seq_pad[:S]
    h_n = out_seq[S - 1:S]          # h_n is identical to the last output row
    c_n = c_last[None]
    return out_seq, h_n, c_n


def eeg_embedding_lstm_forward(x, subject_id, params, *,
                               matmul_dtype=jnp.float32, time_chunk=None):
    """x: (S, B, 1) float32; subject_id: (B,) int32 (or None if no embedding)."""
    w_ih = jnp.asarray(params["w_ih"], jnp.float32)      # (4H, E+1)
    w_hh = jnp.asarray(params["w_hh"], jnp.float32)      # (4H, H)
    bias = (jnp.asarray(params["b_ih"], jnp.float32)
            + jnp.asarray(params["b_hh"], jnp.float32))  # (4H,)
    H = w_hh.shape[1]

    # Reorder PyTorch gate blocks [i, f, g, o] -> [i, f, o, g] so the kernel
    # applies sigmoid to one contiguous 3H slice and tanh to the trailing H.
    perm = jnp.concatenate([jnp.arange(0, 2 * H),
                            jnp.arange(3 * H, 4 * H),
                            jnp.arange(2 * H, 3 * H)])
    w_ih = w_ih[perm]
    w_hh = w_hh[perm]
    bias = bias[perm]

    S, B, _ = x.shape
    # Time-invariant part of the input projection: the subject embedding is the
    # same at every timestep, so project it once and keep it resident; only the
    # scalar EEG feature x is streamed through the kernel.
    if params.get("embedding_lut") is not None and subject_id is not None:
        emb = jnp.take(jnp.asarray(params["embedding_lut"], jnp.float32),
                       subject_id, axis=0)               # (B, E)
        const_proj = emb @ w_ih[:, 1:].T + bias          # (B, 4H)
    else:
        const_proj = jnp.broadcast_to(bias[None, :], (B, 4 * H))
    w_x_col = w_ih[:, 0][None, :]                        # (1, 4H)
    w_hh_t = w_hh.T.astype(matmul_dtype)                 # (H, 4H)

    out_seq, h_n, c_n = lstm_pallas(x, const_proj, w_x_col, w_hh_t,
                                    time_chunk=time_chunk)
    return out_seq, (h_n, c_n)


def _reference_lstm(lstm_input, w_ih, w_hh, b_ih, b_hh):
    """Pure-JAX reference matching torch.nn.LSTM (single layer)."""
    S, B, _ = lstm_input.shape
    H = w_hh.shape[1]
    h0 = jnp.zeros((B, H), jnp.float32)
    c0 = jnp.zeros((B, H), jnp.float32)

    def step(carry, x_t):
        h, c = carry
        gates = x_t @ w_ih.T + h @ w_hh.T + b_ih + b_hh
        i = jax.nn.sigmoid(gates[:, 0:H])
        f = jax.nn.sigmoid(gates[:, H:2 * H])
        g = jnp.tanh(gates[:, 2 * H:3 * H])
        o = jax.nn.sigmoid(gates[:, 3 * H:4 * H])
        c_new = f * c + i * g
        h_new = o * jnp.tanh(c_new)
        return (h_new, c_new), h_new

    (h_n, c_n), ys = lax.scan(step, (h0, c0), lstm_input)
    return ys, h_n[None], c_n[None]


def init_params(key, hidden_size, embedding_size, n_subjects):
    input_size = embedding_size + 1
    k_emb, k1, k2, k3, k4 = jax.random.split(key, 5)
    bound = 1.0 / jnp.sqrt(hidden_size)
    return {
        # nn.Embedding default init: N(0, 1)
        "embedding_lut": jax.random.normal(
            k_emb, (n_subjects, embedding_size), jnp.float32),
        # nn.LSTM default init: U(-1/sqrt(H), 1/sqrt(H))
        "w_ih": jax.random.uniform(
            k1, (4 * hidden_size, input_size), jnp.float32, -bound, bound),
        "w_hh": jax.random.uniform(
            k2, (4 * hidden_size, hidden_size), jnp.float32, -bound, bound),
        "b_ih": jax.random.uniform(
            k3, (4 * hidden_size,), jnp.float32, -bound, bound),
        "b_hh": jax.random.uniform(
            k4, (4 * hidden_size,), jnp.float32, -bound, bound),
    }


if __name__ == "__main__":
    hidden_size = 32
    embedding_size = 8
    n_subjects = 4
    seq_len = 8
    batch = 2

    key = jax.random.PRNGKey(0)
    k_params, k_x, k_sid = jax.random.split(key, 3)

    params = init_params(k_params, hidden_size, embedding_size, n_subjects)
    x = jax.random.normal(k_x, (seq_len, batch, 1), jnp.float32)
    subject_id = jax.random.randint(k_sid, (batch,), 0, n_subjects)

    # Pure-JAX reference of the exact module math (concat + full LSTM).
    emb = jnp.take(params["embedding_lut"], subject_id, axis=0)
    lstm_in = jnp.concatenate(
        [x, jnp.broadcast_to(emb[None], (seq_len,) + emb.shape)], axis=-1)
    ref_seq, ref_h, ref_c = _reference_lstm(
        lstm_in, params["w_ih"], params["w_hh"], params["b_ih"], params["b_hh"])

    # 1) Default path (f32 matmul operands, T chosen by the VMEM budget).
    out_seq, (h_n, c_n) = eeg_embedding_lstm_forward(x, subject_id, params)
    jax.block_until_ready((out_seq, h_n, c_n))
    assert out_seq.shape == (seq_len, batch, hidden_size)
    assert h_n.shape == (1, batch, hidden_size)
    assert c_n.shape == (1, batch, hidden_size)
    assert jnp.allclose(out_seq, ref_seq, atol=1e-4, rtol=1e-4)
    assert jnp.allclose(h_n, ref_h, atol=1e-4, rtol=1e-4)
    assert jnp.allclose(c_n, ref_c, atol=1e-4, rtol=1e-4)

    # 2) Ragged-chunk path: T=3 exercises multi-chunk carries + tail pad/mask.
    out_seq2, (h_n2, c_n2) = eeg_embedding_lstm_forward(
        x, subject_id, params, time_chunk=3)
    jax.block_until_ready((out_seq2, h_n2, c_n2))
    assert jnp.allclose(out_seq2, ref_seq, atol=1e-4, rtol=1e-4)
    assert jnp.allclose(h_n2, ref_h, atol=1e-4, rtol=1e-4)
    assert jnp.allclose(c_n2, ref_c, atol=1e-4, rtol=1e-4)

    # 3) bf16 recurrent-matmul operands (f32 accumulation, f32 gate/cell math).
    out_seq3, (h_n3, c_n3) = eeg_embedding_lstm_forward(
        x, subject_id, params, matmul_dtype=jnp.bfloat16)
    jax.block_until_ready((out_seq3, h_n3, c_n3))
    assert jnp.allclose(out_seq3, ref_seq, atol=2e-2, rtol=2e-2)
    assert jnp.allclose(c_n3, ref_c, atol=2e-2, rtol=2e-2)

    print("KERNEL_OK")
</pallas_src>

<mosaic_0001>
module attributes {stable_mosaic.version = 11 : i64} {
  func.func @_lstm_chunk_kernel(%arg0: i32, %arg1: memref<8x2x1xf32, #tpu.memory_space<vmem>>, %arg2: memref<1x128xf32, #tpu.memory_space<vmem>>, %arg3: memref<2x128xf32, #tpu.memory_space<vmem>>, %arg4: memref<32x128xf32, #tpu.memory_space<vmem>>, %arg5: memref<8x2x32xf32, #tpu.memory_space<vmem>>, %arg6: memref<2x32xf32, #tpu.memory_space<vmem>>, %arg7: memref<2x32xf32, #tpu.memory_space<vmem>>, %arg8: memref<2x32xf32, #tpu.memory_space<vmem>>) attributes {dimension_semantics = [#tpu.dimension_semantics<arbitrary>], iteration_bounds = array<i64: 1>, scalar_prefetch = 0 : i64, scratch_operands = 2 : i64, tpu.core_type = #tpu.core_type<tc>, window_params = [{transform_indices = @transform_0, window_bounds = array<i64: 8, 2, 1>}, {pipeline_mode = #tpu.pipeline_mode<synchronous>, transform_indices = @transform_1, window_bounds = array<i64: 1, 128>}, {pipeline_mode = #tpu.pipeline_mode<synchronous>, transform_indices = @transform_2, window_bounds = array<i64: 2, 128>}, {pipeline_mode = #tpu.pipeline_mode<synchronous>, transform_indices = @transform_3, window_bounds = array<i64: 32, 128>}, {transform_indices = @transform_4, window_bounds = array<i64: 8, 2, 32>}, {pipeline_mode = #tpu.pipeline_mode<synchronous>, transform_indices = @transform_5, window_bounds = array<i64: 2, 32>}]} {
    %c0_i32 = arith.constant 0 : i32
    %0 = arith.cmpi eq, %arg0, %c0_i32 : i32
    %1 = arith.extui %0 : i1 to i32
    %c0_i32_0 = arith.constant 0 : i32
    %2 = arith.cmpi ne, %1, %c0_i32_0 : i32
    scf.if %2 {
      %cst_64 = arith.constant 0.000000e+00 : f32
      %243 = vector.broadcast %cst_64 : f32 to vector<2x32xf32>
      %c0_65 = arith.constant 0 : index
      %c0_66 = arith.constant 0 : index
      %244 = vector.load %arg7[%c0_65, %c0_66] : memref<2x32xf32, #tpu.memory_space<vmem>>, vector<2x32xf32>
      tpu.vector_store %arg7[%c0_65, %c0_66], %243 {strides = array<i32>} : memref<2x32xf32, #tpu.memory_space<vmem>>, vector<2x32xf32>,
      %cst_67 = arith.constant 0.000000e+00 : f32
      %245 = vector.broadcast %cst_67 : f32 to vector<2x32xf32>
      %c0_68 = arith.constant 0 : index
      %c0_69 = arith.constant 0 : index
      %246 = vector.load %arg8[%c0_68, %c0_69] : memref<2x32xf32, #tpu.memory_space<vmem>>, vector<2x32xf32>
      tpu.vector_store %arg8[%c0_68, %c0_69], %245 {strides = array<i32>} : memref<2x32xf32, #tpu.memory_space<vmem>>, vector<2x32xf32>,
    } else {
    }
    %c0 = arith.constant 0 : index
    %c0_1 = arith.constant 0 : index
    %3 = vector.load %arg4[%c0, %c0_1] : memref<32x128xf32, #tpu.memory_space<vmem>>, vector<32x128xf32>
    %c0_2 = arith.constant 0 : index
    %c0_3 = arith.constant 0 : index
    %4 = vector.load %arg2[%c0_2, %c0_3] : memref<1x128xf32, #tpu.memory_space<vmem>>, vector<1x128xf32>
    %c0_4 = arith.constant 0 : index
    %c0_5 = arith.constant 0 : index
    %5 = vector.load %arg3[%c0_4, %c0_5] : memref<2x128xf32, #tpu.memory_space<vmem>>, vector<2x128xf32>
    %c0_6 = arith.constant 0 : index
    %c0_7 = arith.constant 0 : index
    %6 = vector.load %arg7[%c0_6, %c0_7] : memref<2x32xf32, #tpu.memory_space<vmem>>, vector<2x32xf32>
    %c0_8 = arith.constant 0 : index
    %c0_9 = arith.constant 0 : index
    %7 = vector.load %arg8[%c0_8, %c0_9] : memref<2x32xf32, #tpu.memory_space<vmem>>, vector<2x32xf32>
    %c0_i32_10 = arith.constant 0 : i32
    %8 = arith.index_cast %c0_i32_10 : i32 to index
    %c0_11 = arith.constant 0 : index
    %c0_12 = arith.constant 0 : index
    %9 = vector.load %arg1[%8, %c0_11, %c0_12] : memref<8x2x1xf32, #tpu.memory_space<vmem>>, vector<1x2x1xf32>
    %10 = vector.shape_cast %9 : vector<1x2x1xf32> to vector<2x1xf32>
    %11 = vector.broadcast %10 : vector<2x1xf32> to vector<2x128xf32>
    %12 = vector.broadcast %4 : vector<1x128xf32> to vector<2x128xf32>
    %13 = arith.mulf %11, %12 : vector<2x128xf32>
    %14 = arith.addf %5, %13 : vector<2x128xf32>
    %cst = arith.constant dense<0.000000e+00> : vector<2x128xf32>
    %15 = tpu.matmul %6, %3, %cst {dimension_numbers = #tpu.dot_dimension_numbers<[1], [0], [0], [1], [0, 0, 1, 1], [], []>} : vector<2x32xf32>, vector<32x128xf32>, vector<2x128xf32> -> vector<2x128xf32>
    %16 = arith.addf %14, %15 : vector<2x128xf32>
    %17 = vector.extract_strided_slice %16 {offsets = [0, 0], sizes = [2, 96], strides = [1, 1]} : vector<2x128xf32> to vector<2x96xf32>
    %18 = arith.negf %17 : vector<2x96xf32>
    %19 = math.exp %18 : vector<2x96xf32>
    %cst_13 = arith.constant 1.000000e+00 : f32
    %20 = vector.broadcast %cst_13 : f32 to vector<2x96xf32>
    %21 = arith.addf %20, %19 : vector<2x96xf32>
    %22 = arith.divf %20, %21 : vector<2x96xf32>
    %23 = vector.extract_strided_slice %22 {offsets = [0, 0], sizes = [2, 32], strides = [1, 1]} : vector<2x96xf32> to vector<2x32xf32>
    %24 = vector.extract_strided_slice %22 {offsets = [0, 32], sizes = [2, 32], strides = [1, 1]} : vector<2x96xf32> to vector<2x32xf32>
    %25 = vector.extract_strided_slice %22 {offsets = [0, 64], sizes = [2, 32], strides = [1, 1]} : vector<2x96xf32> to vector<2x32xf32>
    %26 = vector.extract_strided_slice %16 {offsets = [0, 96], sizes = [2, 32], strides = [1, 1]} : vector<2x128xf32> to vector<2x32xf32>
    %27 = math.tanh %26 : vector<2x32xf32>
    %28 = arith.mulf %24, %7 : vector<2x32xf32>
    %29 = arith.mulf %23, %27 : vector<2x32xf32>
    %30 = arith.addf %28, %29 : vector<2x32xf32>
    %31 = math.tanh %30 : vector<2x32xf32>
    %32 = arith.mulf %25, %31 : vector<2x32xf32>
    %33 = arith.index_cast %c0_i32_10 : i32 to index
    %c0_14 = arith.constant 0 : index
    %c0_15 = arith.constant 0 : index
    %34 = vector.load %arg5[%33, %c0_14, %c0_15] : memref<8x2x32xf32, #tpu.memory_space<vmem>>, vector<1x2x32xf32>
    %35 = vector.shape_cast %34 : vector<1x2x32xf32> to vector<2x32xf32>
    %36 = vector.shape_cast %32 : vector<2x32xf32> to vector<1x2x32xf32>
    tpu.vector_store %arg5[%33, %c0_14, %c0_15], %36 {strides = array<i32>} : memref<8x2x32xf32, #tpu.memory_space<vmem>>, vector<1x2x32xf32>,
    %c1_i32 = arith.constant 1 : i32
    %37 = arith.index_cast %c1_i32 : i32 to index
    %c0_16 = arith.constant 0 : index
    %c0_17 = arith.constant 0 : index
    %38 = vector.load %arg1[%37, %c0_16, %c0_17] : memref<8x2x1xf32, #tpu.memory_space<vmem>>, vector<1x2x1xf32>
    %39 = vector.shape_cast %38 : vector<1x2x1xf32> to vector<2x1xf32>
    %40 = vector.broadcast %39 : vector<2x1xf32> to vector<2x128xf32>
    %41 = vector.broadcast %4 : vector<1x128xf32> to vector<2x128xf32>
    %42 = arith.mulf %40, %41 : vector<2x128xf32>
    %43 = arith.addf %5, %42 : vector<2x128xf32>
    %cst_18 = arith.constant dense<0.000000e+00> : vector<2x128xf32>
    %44 = tpu.matmul %32, %3, %cst_18 {dimension_numbers = #tpu.dot_dimension_numbers<[1], [0], [0], [1], [0, 0, 1, 1], [], []>} : vector<2x32xf32>, vector<32x128xf32>, vector<2x128xf32> -> vector<2x128xf32>
    %45 = arith.addf %43, %44 : vector<2x128xf32>
    %46 = vector.extract_strided_slice %45 {offsets = [0, 0], sizes = [2, 96], strides = [1, 1]} : vector<2x128xf32> to vector<2x96xf32>
    %47 = arith.negf %46 : vector<2x96xf32>
    %48 = math.exp %47 : vector<2x96xf32>
    %cst_19 = arith.constant 1.000000e+00 : f32
    %49 = vector.broadcast %cst_19 : f32 to vector<2x96xf32>
    %50 = arith.addf %49, %48 : vector<2x96xf32>
    %51 = arith.divf %49, %50 : vector<2x96xf32>
    %52 = vector.extract_strided_slice %51 {offsets = [0, 0], sizes = [2, 32], strides = [1, 1]} : vector<2x96xf32> to vector<2x32xf32>
    %53 = vector.extract_strided_slice %51 {offsets = [0, 32], sizes = [2, 32], strides = [1, 1]} : vector<2x96xf32> to vector<2x32xf32>
    %54 = vector.extract_strided_slice %51 {offsets = [0, 64], sizes = [2, 32], strides = [1, 1]} : vector<2x96xf32> to vector<2x32xf32>
    %55 = vector.extract_strided_slice %45 {offsets = [0, 96], sizes = [2, 32], strides = [1, 1]} : vector<2x128xf32> to vector<2x32xf32>
    %56 = math.tanh %55 : vector<2x32xf32>
    %57 = arith.mulf %53, %30 : vector<2x32xf32>
    %58 = arith.mulf %52, %56 : vector<2x32xf32>
    %59 = arith.addf %57, %58 : vector<2x32xf32>
    %60 = math.tanh %59 : vector<2x32xf32>
    %61 = arith.mulf %54, %60 : vector<2x32xf32>
    %62 = arith.index_cast %c1_i32 : i32 to index
    %c0_20 = arith.constant 0 : index
    %c0_21 = arith.constant 0 : index
    %63 = vector.load %arg5[%62, %c0_20, %c0_21] : memref<8x2x32xf32, #tpu.memory_space<vmem>>, vector<1x2x32xf32>
    %64 = vector.shape_cast %63 : vector<1x2x32xf32> to vector<2x32xf32>
    %65 = vector.shape_cast %61 : vector<2x32xf32> to vector<1x2x32xf32>
    tpu.vector_store %arg5[%62, %c0_20, %c0_21], %65 {strides = array<i32>} : memref<8x2x32xf32, #tpu.memory_space<vmem>>, vector<1x2x32xf32>,
    %c2_i32 = arith.constant 2 : i32
    %66 = arith.index_cast %c2_i32 : i32 to index
    %c0_22 = arith.constant 0 : index
    %c0_23 = arith.constant 0 : index
    %67 = vector.load %arg1[%66, %c0_22, %c0_23] : memref<8x2x1xf32, #tpu.memory_space<vmem>>, vector<1x2x1xf32>
    %68 = vector.shape_cast %67 : vector<1x2x1xf32> to vector<2x1xf32>
    %69 = vector.broadcast %68 : vector<2x1xf32> to vector<2x128xf32>
    %70 = vector.broadcast %4 : vector<1x128xf32> to vector<2x128xf32>
    %71 = arith.mulf %69, %70 : vector<2x128xf32>
    %72 = arith.addf %5, %71 : vector<2x128xf32>
    %cst_24 = arith.constant dense<0.000000e+00> : vector<2x128xf32>
    %73 = tpu.matmul %61, %3, %cst_24 {dimension_numbers = #tpu.dot_dimension_numbers<[1], [0], [0], [1], [0, 0, 1, 1], [], []>} : vector<2x32xf32>, vector<32x128xf32>, vector<2x128xf32> -> vector<2x128xf32>
    %74 = arith.addf %72, %73 : vector<2x128xf32>
    %75 = vector.extract_strided_slice %74 {offsets = [0, 0], sizes = [2, 96], strides = [1, 1]} : vector<2x128xf32> to vector<2x96xf32>
    %76 = arith.negf %75 : vector<2x96xf32>
    %77 = math.exp %76 : vector<2x96xf32>
    %cst_25 = arith.constant 1.000000e+00 : f32
    %78 = vector.broadcast %cst_25 : f32 to vector<2x96xf32>
    %79 = arith.addf %78, %77 : vector<2x96xf32>
    %80 = arith.divf %78, %79 : vector<2x96xf32>
    %81 = vector.extract_strided_slice %80 {offsets = [0, 0], sizes = [2, 32], strides = [1, 1]} : vector<2x96xf32> to vector<2x32xf32>
    %82 = vector.extract_strided_slice %80 {offsets = [0, 32], sizes = [2, 32], strides = [1, 1]} : vector<2x96xf32> to vector<2x32xf32>
    %83 = vector.extract_strided_slice %80 {offsets = [0, 64], sizes = [2, 32], strides = [1, 1]} : vector<2x96xf32> to vector<2x32xf32>
    %84 = vector.extract_strided_slice %74 {offsets = [0, 96], sizes = [2, 32], strides = [1, 1]} : vector<2x128xf32> to vector<2x32xf32>
    %85 = math.tanh %84 : vector<2x32xf32>
    %86 = arith.mulf %82, %59 : vector<2x32xf32>
    %87 = arith.mulf %81, %85 : vector<2x32xf32>
    %88 = arith.addf %86, %87 : vector<2x32xf32>
    %89 = math.tanh %88 : vector<2x32xf32>
    %90 = arith.mulf %83, %89 : vector<2x32xf32>
    %91 = arith.index_cast %c2_i32 : i32 to index
    %c0_26 = arith.constant 0 : index
    %c0_27 = arith.constant 0 : index
    %92 = vector.load %arg5[%91, %c0_26, %c0_27] : memref<8x2x32xf32, #tpu.memory_space<vmem>>, vector<1x2x32xf32>
    %93 = vector.shape_cast %92 : vector<1x2x32xf32> to vector<2x32xf32>
    %94 = vector.shape_cast %90 : vector<2x32xf32> to vector<1x2x32xf32>
    tpu.vector_store %arg5[%91, %c0_26, %c0_27], %94 {strides = array<i32>} : memref<8x2x32xf32, #tpu.memory_space<vmem>>, vector<1x2x32xf32>,
    %c3_i32 = arith.constant 3 : i32
    %95 = arith.index_cast %c3_i32 : i32 to index
    %c0_28 = arith.constant 0 : index
    %c0_29 = arith.constant 0 : index
    %96 = vector.load %arg1[%95, %c0_28, %c0_29] : memref<8x2x1xf32, #tpu.memory_space<vmem>>, vector<1x2x1xf32>
    %97 = vector.shape_cast %96 : vector<1x2x1xf32> to vector<2x1xf32>
    %98 = vector.broadcast %97 : vector<2x1xf32> to vector<2x128xf32>
    %99 = vector.broadcast %4 : vector<1x128xf32> to vector<2x128xf32>
    %100 = arith.mulf %98, %99 : vector<2x128xf32>
    %101 = arith.addf %5, %100 : vector<2x128xf32>
    %cst_30 = arith.constant dense<0.000000e+00> : vector<2x128xf32>
    %102 = tpu.matmul %90, %3, %cst_30 {dimension_numbers = #tpu.dot_dimension_numbers<[1], [0], [0], [1], [0, 0, 1, 1], [], []>} : vector<2x32xf32>, vector<32x128xf32>, vector<2x128xf32> -> vector<2x128xf32>
    %103 = arith.addf %101, %102 : vector<2x128xf32>
    %104 = vector.extract_strided_slice %103 {offsets = [0, 0], sizes = [2, 96], strides = [1, 1]} : vector<2x128xf32> to vector<2x96xf32>
    %105 = arith.negf %104 : vector<2x96xf32>
    %106 = math.exp %105 : vector<2x96xf32>
    %cst_31 = arith.constant 1.000000e+00 : f32
    %107 = vector.broadcast %cst_31 : f32 to vector<2x96xf32>
    %108 = arith.addf %107, %106 : vector<2x96xf32>
    %109 = arith.divf %107, %108 : vector<2x96xf32>
    %110 = vector.extract_strided_slice %109 {offsets = [0, 0], sizes = [2, 32], strides = [1, 1]} : vector<2x96xf32> to vector<2x32xf32>
    %111 = vector.extract_strided_slice %109 {offsets = [0, 32], sizes = [2, 32], strides = [1, 1]} : vector<2x96xf32> to vector<2x32xf32>
    %112 = vector.extract_strided_slice %109 {offsets = [0, 64], sizes = [2, 32], strides = [1, 1]} : vector<2x96xf32> to vector<2x32xf32>
    %113 = vector.extract_strided_slice %103 {offsets = [0, 96], sizes = [2, 32], strides = [1, 1]} : vector<2x128xf32> to vector<2x32xf32>
    %114 = math.tanh %113 : vector<2x32xf32>
    %115 = arith.mulf %111, %88 : vector<2x32xf32>
    %116 = arith.mulf %110, %114 : vector<2x32xf32>
    %117 = arith.addf %115, %116 : vector<2x32xf32>
    %118 = math.tanh %117 : vector<2x32xf32>
    %119 = arith.mulf %112, %118 : vector<2x32xf32>
    %120 = arith.index_cast %c3_i32 : i32 to index
    %c0_32 = arith.constant 0 : index
    %c0_33 = arith.constant 0 : index
    %121 = vector.load %arg5[%120, %c0_32, %c0_33] : memref<8x2x32xf32, #tpu.memory_space<vmem>>, vector<1x2x32xf32>
    %122 = vector.shape_cast %121 : vector<1x2x32xf32> to vector<2x32xf32>
    %123 = vector.shape_cast %119 : vector<2x32xf32> to vector<1x2x32xf32>
    tpu.vector_store %arg5[%120, %c0_32, %c0_33], %123 {strides = array<i32>} : memref<8x2x32xf32, #tpu.memory_space<vmem>>, vector<1x2x32xf32>,
    %c4_i32 = arith.constant 4 : i32
    %124 = arith.index_cast %c4_i32 : i32 to index
    %c0_34 = arith.constant 0 : index
    %c0_35 = arith.constant 0 : index
    %125 = vector.load %arg1[%124, %c0_34, %c0_35] : memref<8x2x1xf32, #tpu.memory_space<vmem>>, vector<1x2x1xf32>
    %126 = vector.shape_cast %125 : vector<1x2x1xf32> to vector<2x1xf32>
    %127 = vector.broadcast %126 : vector<2x1xf32> to vector<2x128xf32>
    %128 = vector.broadcast %4 : vector<1x128xf32> to vector<2x128xf32>
    %129 = arith.mulf %127, %128 : vector<2x128xf32>
    %130 = arith.addf %5, %129 : vector<2x128xf32>
    %cst_36 = arith.constant dense<0.000000e+00> : vector<2x128xf32>
    %131 = tpu.matmul %119, %3, %cst_36 {dimension_numbers = #tpu.dot_dimension_numbers<[1], [0], [0], [1], [0, 0, 1, 1], [], []>} : vector<2x32xf32>, vector<32x128xf32>, vector<2x128xf32> -> vector<2x128xf32>
    %132 = arith.addf %130, %131 : vector<2x128xf32>
    %133 = vector.extract_strided_slice %132 {offsets = [0, 0], sizes = [2, 96], strides = [1, 1]} : vector<2x128xf32> to vector<2x96xf32>
    %134 = arith.negf %133 : vector<2x96xf32>
    %135 = math.exp %134 : vector<2x96xf32>
    %cst_37 = arith.constant 1.000000e+00 : f32
    %136 = vector.broadcast %cst_37 : f32 to vector<2x96xf32>
    %137 = arith.addf %136, %135 : vector<2x96xf32>
    %138 = arith.divf %136, %137 : vector<2x96xf32>
    %139 = vector.extract_strided_slice %138 {offsets = [0, 0], sizes = [2, 32], strides = [1, 1]} : vector<2x96xf32> to vector<2x32xf32>
    %140 = vector.extract_strided_slice %138 {offsets = [0, 32], sizes = [2, 32], strides = [1, 1]} : vector<2x96xf32> to vector<2x32xf32>
    %141 = vector.extract_strided_slice %138 {offsets = [0, 64], sizes = [2, 32], strides = [1, 1]} : vector<2x96xf32> to vector<2x32xf32>
    %142 = vector.extract_strided_slice %132 {offsets = [0, 96], sizes = [2, 32], strides = [1, 1]} : vector<2x128xf32> to vector<2x32xf32>
    %143 = math.tanh %142 : vector<2x32xf32>
    %144 = arith.mulf %140, %117 : vector<2x32xf32>
    %145 = arith.mulf %139, %143 : vector<2x32xf32>
    %146 = arith.addf %144, %145 : vector<2x32xf32>
    %147 = math.tanh %146 : vector<2x32xf32>
    %148 = arith.mulf %141, %147 : vector<2x32xf32>
    %149 = arith.index_cast %c4_i32 : i32 to index
    %c0_38 = arith.constant 0 : index
    %c0_39 = arith.constant 0 : index
    %150 = vector.load %arg5[%149, %c0_38, %c0_39] : memref<8x2x32xf32, #tpu.memory_space<vmem>>, vector<1x2x32xf32>
    %151 = vector.shape_cast %150 : vector<1x2x32xf32> to vector<2x32xf32>
    %152 = vector.shape_cast %148 : vector<2x32xf32> to vector<1x2x32xf32>
    tpu.vector_store %arg5[%149, %c0_38, %c0_39], %152 {strides = array<i32>} : memref<8x2x32xf32, #tpu.memory_space<vmem>>, vector<1x2x32xf32>,
    %c5_i32 = arith.constant 5 : i32
    %153 = arith.index_cast %c5_i32 : i32 to index
    %c0_40 = arith.constant 0 : index
    %c0_41 = arith.constant 0 : index
    %154 = vector.load %arg1[%153, %c0_40, %c0_41] : memref<8x2x1xf32, #tpu.memory_space<vmem>>, vector<1x2x1xf32>
    %155 = vector.shape_cast %154 : vector<1x2x1xf32> to vector<2x1xf32>
    %156 = vector.broadcast %155 : vector<2x1xf32> to vector<2x128xf32>
    %157 = vector.broadcast %4 : vector<1x128xf32> to vector<2x128xf32>
    %158 = arith.mulf %156, %157 : vector<2x128xf32>
    %159 = arith.addf %5, %158 : vector<2x128xf32>
    %cst_42 = arith.constant dense<0.000000e+00> : vector<2x128xf32>
    %160 = tpu.matmul %148, %3, %cst_42 {dimension_numbers = #tpu.dot_dimension_numbers<[1], [0], [0], [1], [0, 0, 1, 1], [], []>} : vector<2x32xf32>, vector<32x128xf32>, vector<2x128xf32> -> vector<2x128xf32>
    %161 = arith.addf %159, %160 : vector<2x128xf32>
    %162 = vector.extract_strided_slice %161 {offsets = [0, 0], sizes = [2, 96], strides = [1, 1]} : vector<2x128xf32> to vector<2x96xf32>
    %163 = arith.negf %162 : vector<2x96xf32>
    %164 = math.exp %163 : vector<2x96xf32>
    %cst_43 = arith.constant 1.000000e+00 : f32
    %165 = vector.broadcast %cst_43 : f32 to vector<2x96xf32>
    %166 = arith.addf %165, %164 : vector<2x96xf32>
    %167 = arith.divf %165, %166 : vector<2x96xf32>
    %168 = vector.extract_strided_slice %167 {offsets = [0, 0], sizes = [2, 32], strides = [1, 1]} : vector<2x96xf32> to vector<2x32xf32>
    %169 = vector.extract_strided_slice %167 {offsets = [0, 32], sizes = [2, 32], strides = [1, 1]} : vector<2x96xf32> to vector<2x32xf32>
    %170 = vector.extract_strided_slice %167 {offsets = [0, 64], sizes = [2, 32], strides = [1, 1]} : vector<2x96xf32> to vector<2x32xf32>
    %171 = vector.extract_strided_slice %161 {offsets = [0, 96], sizes = [2, 32], strides = [1, 1]} : vector<2x128xf32> to vector<2x32xf32>
    %172 = math.tanh %171 : vector<2x32xf32>
    %173 = arith.mulf %169, %146 : vector<2x32xf32>
    %174 = arith.mulf %168, %172 : vector<2x32xf32>
    %175 = arith.addf %173, %174 : vector<2x32xf32>
    %176 = math.tanh %175 : vector<2x32xf32>
    %177 = arith.mulf %170, %176 : vector<2x32xf32>
    %178 = arith.index_cast %c5_i32 : i32 to index
    %c0_44 = arith.constant 0 : index
    %c0_45 = arith.constant 0 : index
    %179 = vector.load %arg5[%178, %c0_44, %c0_45] : memref<8x2x32xf32, #tpu.memory_space<vmem>>, vector<1x2x32xf32>
    %180 = vector.shape_cast %179 : vector<1x2x32xf32> to vector<2x32xf32>
    %181 = vector.shape_cast %177 : vector<2x32xf32> to vector<1x2x32xf32>
    tpu.vector_store %arg5[%178, %c0_44, %c0_45], %181 {strides = array<i32>} : memref<8x2x32xf32, #tpu.memory_space<vmem>>, vector<1x2x32xf32>,
    %c6_i32 = arith.constant 6 : i32
    %182 = arith.index_cast %c6_i32 : i32 to index
    %c0_46 = arith.constant 0 : index
    %c0_47 = arith.constant 0 : index
    %183 = vector.load %arg1[%182, %c0_46, %c0_47] : memref<8x2x1xf32, #tpu.memory_space<vmem>>, vector<1x2x1xf32>
    %184 = vector.shape_cast %183 : vector<1x2x1xf32> to vector<2x1xf32>
    %185 = vector.broadcast %184 : vector<2x1xf32> to vector<2x128xf32>
    %186 = vector.broadcast %4 : vector<1x128xf32> to vector<2x128xf32>
    %187 = arith.mulf %185, %186 : vector<2x128xf32>
    %188 = arith.addf %5, %187 : vector<2x128xf32>
    %cst_48 = arith.constant dense<0.000000e+00> : vector<2x128xf32>
    %189 = tpu.matmul %177, %3, %cst_48 {dimension_numbers = #tpu.dot_dimension_numbers<[1], [0], [0], [1], [0, 0, 1, 1], [], []>} : vector<2x32xf32>, vector<32x128xf32>, vector<2x128xf32> -> vector<2x128xf32>
    %190 = arith.addf %188, %189 : vector<2x128xf32>
    %191 = vector.extract_strided_slice %190 {offsets = [0, 0], sizes = [2, 96], strides = [1, 1]} : vector<2x128xf32> to vector<2x96xf32>
    %192 = arith.negf %191 : vector<2x96xf32>
    %193 = math.exp %192 : vector<2x96xf32>
    %cst_49 = arith.constant 1.000000e+00 : f32
    %194 = vector.broadcast %cst_49 : f32 to vector<2x96xf32>
    %195 = arith.addf %194, %193 : vector<2x96xf32>
    %196 = arith.divf %194, %195 : vector<2x96xf32>
    %197 = vector.extract_strided_slice %196 {offsets = [0, 0], sizes = [2, 32], strides = [1, 1]} : vector<2x96xf32> to vector<2x32xf32>
    %198 = vector.extract_strided_slice %196 {offsets = [0, 32], sizes = [2, 32], strides = [1, 1]} : vector<2x96xf32> to vector<2x32xf32>
    %199 = vector.extract_strided_slice %196 {offsets = [0, 64], sizes = [2, 32], strides = [1, 1]} : vector<2x96xf32> to vector<2x32xf32>
    %200 = vector.extract_strided_slice %190 {offsets = [0, 96], sizes = [2, 32], strides = [1, 1]} : vector<2x128xf32> to vector<2x32xf32>
    %201 = math.tanh %200 : vector<2x32xf32>
    %202 = arith.mulf %198, %175 : vector<2x32xf32>
    %203 = arith.mulf %197, %201 : vector<2x32xf32>
    %204 = arith.addf %202, %203 : vector<2x32xf32>
    %205 = math.tanh %204 : vector<2x32xf32>
    %206 = arith.mulf %199, %205 : vector<2x32xf32>
    %207 = arith.index_cast %c6_i32 : i32 to index
    %c0_50 = arith.constant 0 : index
    %c0_51 = arith.constant 0 : index
    %208 = vector.load %arg5[%207, %c0_50, %c0_51] : memref<8x2x32xf32, #tpu.memory_space<vmem>>, vector<1x2x32xf32>
    %209 = vector.shape_cast %208 : vector<1x2x32xf32> to vector<2x32xf32>
    %210 = vector.shape_cast %206 : vector<2x32xf32> to vector<1x2x32xf32>
    tpu.vector_store %arg5[%207, %c0_50, %c0_51], %210 {strides = array<i32>} : memref<8x2x32xf32, #tpu.memory_space<vmem>>, vector<1x2x32xf32>,
    %c7_i32 = arith.constant 7 : i32
    %211 = arith.index_cast %c7_i32 : i32 to index
    %c0_52 = arith.constant 0 : index
    %c0_53 = arith.constant 0 : index
    %212 = vector.load %arg1[%211, %c0_52, %c0_53] : memref<8x2x1xf32, #tpu.memory_space<vmem>>, vector<1x2x1xf32>
    %213 = vector.shape_cast %212 : vector<1x2x1xf32> to vector<2x1xf32>
    %214 = vector.broadcast %213 : vector<2x1xf32> to vector<2x128xf32>
    %215 = vector.broadcast %4 : vector<1x128xf32> to vector<2x128xf32>
    %216 = arith.mulf %214, %215 : vector<2x128xf32>
    %217 = arith.addf %5, %216 : vector<2x128xf32>
    %cst_54 = arith.constant dense<0.000000e+00> : vector<2x128xf32>
    %218 = tpu.matmul %206, %3, %cst_54 {dimension_numbers = #tpu.dot_dimension_numbers<[1], [0], [0], [1], [0, 0, 1, 1], [], []>} : vector<2x32xf32>, vector<32x128xf32>, vector<2x128xf32> -> vector<2x128xf32>
    %219 = arith.addf %217, %218 : vector<2x128xf32>
    %220 = vector.extract_strided_slice %219 {offsets = [0, 0], sizes = [2, 96], strides = [1, 1]} : vector<2x128xf32> to vector<2x96xf32>
    %221 = arith.negf %220 : vector<2x96xf32>
    %222 = math.exp %221 : vector<2x96xf32>
    %cst_55 = arith.constant 1.000000e+00 : f32
    %223 = vector.broadcast %cst_55 : f32 to vector<2x96xf32>
    %224 = arith.addf %223, %222 : vector<2x96xf32>
    %225 = arith.divf %223, %224 : vector<2x96xf32>
    %226 = vector.extract_strided_slice %225 {offsets = [0, 0], sizes = [2, 32], strides = [1, 1]} : vector<2x96xf32> to vector<2x32xf32>
    %227 = vector.extract_strided_slice %225 {offsets = [0, 32], sizes = [2, 32], strides = [1, 1]} : vector<2x96xf32> to vector<2x32xf32>
    %228 = vector.extract_strided_slice %225 {offsets = [0, 64], sizes = [2, 32], strides = [1, 1]} : vector<2x96xf32> to vector<2x32xf32>
    %229 = vector.extract_strided_slice %219 {offsets = [0, 96], sizes = [2, 32], strides = [1, 1]} : vector<2x128xf32> to vector<2x32xf32>
    %230 = math.tanh %229 : vector<2x32xf32>
    %231 = arith.mulf %227, %204 : vector<2x32xf32>
    %232 = arith.mulf %226, %230 : vector<2x32xf32>
    %233 = arith.addf %231, %232 : vector<2x32xf32>
    %234 = math.tanh %233 : vector<2x32xf32>
    %235 = arith.mulf %228, %234 : vector<2x32xf32>
    %236 = arith.index_cast %c7_i32 : i32 to index
    %c0_56 = arith.constant 0 : index
    %c0_57 = arith.constant 0 : index
    %237 = vector.load %arg5[%236, %c0_56, %c0_57] : memref<8x2x32xf32, #tpu.memory_space<vmem>>, vector<1x2x32xf32>
    %238 = vector.shape_cast %237 : vector<1x2x32xf32> to vector<2x32xf32>
    %239 = vector.shape_cast %235 : vector<2x32xf32> to vector<1x2x32xf32>
    tpu.vector_store %arg5[%236, %c0_56, %c0_57], %239 {strides = array<i32>} : memref<8x2x32xf32, #tpu.memory_space<vmem>>, vector<1x2x32xf32>,
    %c8_i32 = arith.constant 8 : i32
    %c0_58 = arith.constant 0 : index
    %c0_59 = arith.constant 0 : index
    %240 = vector.load %arg7[%c0_58, %c0_59] : memref<2x32xf32, #tpu.memory_space<vmem>>, vector<2x32xf32>
    tpu.vector_store %arg7[%c0_58, %c0_59], %235 {strides = array<i32>} : memref<2x32xf32, #tpu.memory_space<vmem>>, vector<2x32xf32>,
    %c0_60 = arith.constant 0 : index
    %c0_61 = arith.constant 0 : index
    %241 = vector.load %arg8[%c0_60, %c0_61] : memref<2x32xf32, #tpu.memory_space<vmem>>, vector<2x32xf32>
    tpu.vector_store %arg8[%c0_60, %c0_61], %233 {strides = array<i32>} : memref<2x32xf32, #tpu.memory_space<vmem>>, vector<2x32xf32>,
    %c0_62 = arith.constant 0 : index
    %c0_63 = arith.constant 0 : index
    %242 = vector.load %arg6[%c0_62, %c0_63] : memref<2x32xf32, #tpu.memory_space<vmem>>, vector<2x32xf32>
    tpu.vector_store %arg6[%c0_62, %c0_63], %233 {strides = array<i32>} : memref<2x32xf32, #tpu.memory_space<vmem>>, vector<2x32xf32>,
    return
  }
  func.func @transform_0(%arg0: i32) -> (i32, i32, i32) {
    %c0_i32 = arith.constant 0 : i32
    %c0_i32_0 = arith.constant 0 : i32
    %c0_i32_1 = arith.constant 0 : i32
    return %arg0, %c0_i32, %c0_i32_0 : i32, i32, i32
  }
  func.func @transform_1(%arg0: i32) -> (i32, i32) {
    %c0_i32 = arith.constant 0 : i32
    %c0_i32_0 = arith.constant 0 : i32
    %c0_i32_1 = arith.constant 0 : i32
    return %c0_i32, %c0_i32_0 : i32, i32
  }
  func.func @transform_2(%arg0: i32) -> (i32, i32) {
    %c0_i32 = arith.constant 0 : i32
    %c0_i32_0 = arith.constant 0 : i32
    %c0_i32_1 = arith.constant 0 : i32
    return %c0_i32, %c0_i32_0 : i32, i32
  }
  func.func @transform_3(%arg0: i32) -> (i32, i32) {
    %c0_i32 = arith.constant 0 : i32
    %c0_i32_0 = arith.constant 0 : i32
    %c0_i32_1 = arith.constant 0 : i32
    return %c0_i32, %c0_i32_0 : i32, i32
  }
  func.func @transform_4(%arg0: i32) -> (i32, i32, i32) {
    %c0_i32 = arith.constant 0 : i32
    %c0_i32_0 = arith.constant 0 : i32
    %c0_i32_1 = arith.constant 0 : i32
    return %arg0, %c0_i32, %c0_i32_0 : i32, i32, i32
  }
  func.func @transform_5(%arg0: i32) -> (i32, i32) {
    %c0_i32 = arith.constant 0 : i32
    %c0_i32_0 = arith.constant 0 : i32
    %c0_i32_1 = arith.constant 0 : i32
    return %c0_i32, %c0_i32_0 : i32, i32
  }
}

</mosaic_0001>

<bundles_post_ra>
// kernel: tpu_custom_call.1
= control target key start
LH: loop header
LB: loop body
LE: loop exit
PB: predicated region body
PF: predicated region fallthrough
CT: control target
= control target key end

     0   :  { %11 = vsyncpa [#allocation5], 0  ;;  %s1585_s0 = inlined_call_operand.vmem [shape: f32[8,2,1], index: 0, kind: input, shape index: {}]   ;;  %s1586_s1 = inlined_call_operand.vmem [shape: f32[1,128], index: 1, kind: input, shape index: {}]   ;;  %s1587_s2 = inlined_call_operand.vmem [shape: f32[2,128], index: 2, kind: input, shape index: {}]   ;;  %s1588_s3 = inlined_call_operand.hbm [shape: f32[32,128], index: 3, kind: input, shape index: {}]   ;;  %s1589_s4 = inlined_call_operand.hbm [shape: f32[8,2,32], index: 4, kind: output, shape index: {0}]   ;;  %s1590_s5 = inlined_call_operand.hbm [shape: f32[2,32], index: 5, kind: output, shape index: {1}]  }
   0x1   :  { %12 = vsyncpa [#allocation6], 0 }
   0x2   :  { %13 = vsyncpa [#allocation9], 0  ;;  %s1346_s18 = smov [#allocation4]   ;;  %s1274_s22 = scalar_lea.hbm %s1588_s3, 512 }
   0x3   :  { %s25_s19 = sshll.u32 %s1346_s18, 4  ;;  %p1275_p0 = scmp.ne.s32.totalorder %s1588_s3, %s1274_s22  ;;  %s26_s19 = int_to_ptr.vmem [resolvable:$true] %s25_s19 }
   0x4   :  { %p1278_p1 = scmp.lt.u32.totalorder %s1274_s22, %s1588_s3 }
   0x6   :  { %p1280_p2 = pnand %p1278_p1, %p1275_p0 }
   0x8   :  { %1283 = shalt.err (!%p1280_p2)
}
   0x9   :  { %s1284_s27 = scalar_lea.vmem %s26_s19, 512  ;;  %p1289_p4 = scmp.lt.s32.totalorder %s26_s19, %s26_s19 }
   0xa   :  { %p1285_p3 = scmp.ne.s32.totalorder %s26_s19, %s1284_s27  ;;  %p1290_p5 = scmp.lt.s32.totalorder %s1284_s27, %s1284_s27 }
   0xc   :  { %p1291_p6 = por %p1290_p5, %p1289_p4 }
   0xe   :  { %p1292_p7 = pnand %p1291_p6, %p1285_p3 }
  0x10   :  { %1295 = shalt.err (!%p1292_p7)
}
  0x11   :  { %s1347_s28 = smov 128   ;;  %s1348_s29 = smov 8  }
  0x12   :  { %31 = dma.hbm_to_vmem [thread:$0]  %s1588_s3, 512, %s26_s19, [#allocation5], %s1347_s28, %s1347_s28, %s1348_s29  }
  0x13   :  { %1340 = dma.done.wait [#allocation5], 512  }
  0x14   :  { %1341 = vsyncadd [#allocation5], 4294966784  ;;  %vm39_vm0 = vcmask 254976   ;;  %v1349_v0 = vmov 0.0|0.0   ;;  %vm1350_vm1 = vmmov 0   ;;  %v1351_v1 = vmov 0.0  }
  0x15   :  { %1147 = vmatprep.subr.bf16.mxu0 %v1349_v0  ;;  %1067 = vmatprep.mubr.msk.f32.mxu0 %vm1350_vm1, %v1351_v1  ;;  %40 = vst.msk [vmem:[#allocation2] sm:$0x3] %vm39_vm0, %v1351_v1  ;;  %41 = vst.msk [vmem:[#allocation3] sm:$0x3] %vm39_vm0, %v1351_v1  ;;  %v1352_v2 = vmov 0   ;;  %v42_v3 = vld [vmem:[#allocation4] sm:$0xff] }
  0x16   :  { %1208 = vset.pattern.permute.xlu0 %v1352_v2  ;;  %1153 = vmatprep.subr.bf16.mxu1 %v1349_v0  ;;  %v43_v4 = vld [vmem:[#allocation4 + $0x8] sm:$0xff]  ;;  %v44_v5 = vld [vmem:[#allocation4 + $0x10] sm:$0xff]  ;;  %v45_v7 = vld [vmem:[#allocation4 + $0x18] sm:$0xff]  ;;  %s1353_s8 = smov 32   ;;  %vm64_vm2 = vcmask 261120   ;;  %s1354_s13 = smov 64  }
  0x17   :  { %1078 = vmatprep.mubr.msk.f32.mxu1 %vm1350_vm1, %v1351_v1  ;;  %1209 = vset.pattern.permute.xlu1 %v1352_v2  ;;  %v1411_v6 = vpack.c.bf16 %v43_v4, %v42_v3  ;;  %v50_v8 = vld [vmem:[%s1585_s0] sm:$0x3]  ;;  %v1417_v10 = vpack.c.bf16 %v45_v7, %v44_v5  ;;  %v998_v32 = vld [vmem:[%s1585_s0 + $0x2] sm:$0x3]  ;;  %v1001_v53 = vld [vmem:[%s1585_s0 + $0x4] sm:$0x3] }
  0x18   :  { %53 = vperm.xlu0 %1208, %v50_v8   ;;  %v1437_v13 = vld [vmem:[%s1586_s1] ss:$0 sm:$0xff]  ;;  %s1356_s26 = smov [#allocation8]  }
  0x19   :  { %1149 = vmatpush3.bf16.msra.mxu0 %v1411_v6  ;;  %1155 = vmatpush3.bf16.msra.mxu1 %v1411_v6  ;;  %v1443_v15 = vld [vmem:[%s1587_s2] sm:$0x3]  ;;  %s982_s27 = sshll.u32 %s1356_s26, 4  ;;  %s983_s27 = int_to_ptr.vmem [resolvable:$true] %s982_s27 }
  0x1a   :  { %1150 = vmatprep.subr.bf16.mxu0 %v1349_v0  ;;  %1156 = vmatprep.subr.bf16.mxu1 %v1349_v0  ;;  %s1296_s28 = scalar_lea.vmem %s983_s27, 32  ;;  %p1301_p9 = scmp.lt.s32.totalorder %s983_s27, %s983_s27 }
  0x1b   :  { %p1297_p8 = scmp.ne.s32.totalorder %s983_s27, %s1296_s28  ;;  %p1302_p10 = scmp.lt.s32.totalorder %s1296_s28, %s1296_s28 }
  0x1c   :  { %v49_v9 = vld [vmem:[#allocation3] sm:$0x3]  ;;  %v48_v11 = vld [vmem:[#allocation2] sm:$0x3] }
  0x1d   :  { %147 = vrot.lane.b32.xlu1 %v49_v9, %s1353_s8  ;;  %1152 = vmatpush3.bf16.msra.mxu0 %v1417_v10  ;;  %p1303_p11 = por %p1302_p10, %p1301_p9 }
  0x1e   :  { %1158 = vmatpush3.bf16.msra.mxu1 %v1417_v10  ;;  %1159 = vmatprep.subr.bf16.mxu0 %v1349_v0 }
  0x1f   :  { %1165 = vmatprep.subr.bf16.mxu1 %v1349_v0  ;;  %p1304_p12 = pnand %p1303_p11, %p1297_p8 }
  0x20   :  { %1068 = vmatmul.mubr.msk.f32.vlgmr.msra.gmra.mrb[0].mxu0 %vm64_vm2, %v48_v11 }
  0x21   :  { %1161 = vmatpush3.bf16.msra.mxu0 %v1411_v6  ;;  %1089 = vmatprep.mubr.msk.f32.mxu0 %vm1350_vm1, %v1351_v1 }
  0x22   :  { %1162 = vmatprep.subr.bf16.mxu0 %v1349_v0 }
  0x25   :  { %1164 = vmatpush3.bf16.msra.mxu0 %v1417_v10 }
  0x26   :  { %1171 = vmatprep.subr.bf16.mxu0 %v1349_v0 }
  0x8f   :  { %v148_v27 = vpop.permute.xlu1 %147 }
  0x97   :  { %v54_v12 = vpop.permute.xlu0 %53 }
  0x98   :  { %v62_v14 = vmul.f32 %v1437_v13, %v54_v12 }
  0x9a   :  { %v63_v16 = vadd.f32 %v62_v14, %v1443_v15 }
  0xf3   :  { %v134_v17 = vpop.f32.mrb[0].mxu0 }
  0xf4   :  { %v138_v18 = vadd.f32 %v134_v17, %v63_v16  ;;  %v1069_v19 = vpop.f32.mrb[1].mxu0  ;;  %v1004_v16 = vld [vmem:[%s1585_s0 + $0x6] sm:$0x3] }
  0xf6   :  { %1210 = vtanh.f32 %v138_v18  ;;  %v997_v21 = vmul.f32 -1.442695, %v138_v18 }
  0xf8   :  { %1212 = vpow2.f32 %v997_v21 }
 0x100   :  { %v1211_v20 = vpop.eup %1210 }
 0x101   :  { %152 = vrot.lane.b32.xlu0 %v1211_v20, %s1353_s8 }
 0x102   :  { %v1213_v22 = vpop.eup %1212 }
 0x103   :  { %v142_v23 = vadd.f32 1.0, %v1213_v22 }
 0x105   :  { %1214 = vrcp.f32 %v142_v23 }
 0x10f   :  { %v1215_v24 = vpop.eup %1214 }
 0x110   :  { %v150_v28 = vmul.f32 %v1215_v24, %v148_v27 }
 0x173   :  { %v153_v25 = vpop.permute.xlu0 %152 }
 0x174   :  { %v155_v26 = vmul.f32 %v1215_v24, %v153_v25 }
 0x176   :  { %157 = vrot.lane.b32.xlu1 %v155_v26, %s1353_s8 }
 0x1e8   :  { %v158_v29 = vpop.permute.xlu1 %157 }
 0x1e9   :  { %v160_v30 = vadd.f32 %v158_v29, %v150_v28 }
 0x1eb   :  { %1216 = vtanh.f32 %v160_v30 }
 0x1f5   :  { %v1217_v31 = vpop.eup %1216 }
 0x1f6   :  { %163 = vrot.lane.b32.xlu0 %v1217_v31, %s1353_s8 }
 0x1fa   :  { %177 = vperm.xlu0 %1208, %v998_v32  }
 0x268   :  { %v164_v33 = vpop.permute.xlu0 %163 }
 0x269   :  { %v166_v34 = vmul.f32 %v1215_v24, %v164_v33 }
 0x26b   :  { %168 = vrot.lane.b32.xlu1 %v166_v34, %s1354_s13 }
 0x279   :  { %v178_v36 = vpop.permute.xlu0 %177 }
 0x27a   :  { %v180_v37 = vmul.f32 %v1437_v13, %v178_v36 }
 0x27c   :  { %v181_v38 = vadd.f32 %v180_v37, %v1443_v15  ;;  %v1007_v37 = vld [vmem:[%s1585_s0 + $0x8] sm:$0x3] }
 0x2dd   :  { %v169_v35 = vpop.permute.xlu1 %168 }
 0x2de   :  { %172 = vst.msk [vmem:[#allocation7] sm:$0x3] %vm39_vm0, %v169_v35  ;;  %1079 = vmatmul.mubr.msk.f32.vlgmr.msra.gmra.mrb[0].mxu1 %vm64_vm2, %v169_v35 }
 0x2df   :  { %1167 = vmatpush3.bf16.msra.mxu1 %v1411_v6  ;;  %1100 = vmatprep.mubr.msk.f32.mxu1 %vm1350_vm1, %v1351_v1 }
 0x2e0   :  { %1168 = vmatprep.subr.bf16.mxu1 %v1349_v0 }
 0x2e3   :  { %1170 = vmatpush3.bf16.msra.mxu1 %v1417_v10 }
 0x2e4   :  { %1177 = vmatprep.subr.bf16.mxu1 %v1349_v0 }
 0x3b1   :  { %v250_v39 = vpop.f32.mrb[0].mxu1 }
 0x3b2   :  { %v254_v40 = vadd.f32 %v250_v39, %v181_v38  ;;  %v1080_v41 = vpop.f32.mrb[1].mxu1 }
 0x3b4   :  { %1218 = vtanh.f32 %v254_v40  ;;  %v1000_v43 = vmul.f32 -1.442695, %v254_v40 }
 0x3b6   :  { %1220 = vpow2.f32 %v1000_v43 }
 0x3be   :  { %v1219_v42 = vpop.eup %1218 }
 0x3bf   :  { %264 = vrot.lane.b32.xlu1 %v1219_v42, %s1353_s8 }
 0x3c0   :  { %v1221_v44 = vpop.eup %1220 }
 0x3c1   :  { %v258_v45 = vadd.f32 1.0, %v1221_v44 }
 0x3c3   :  { %1222 = vrcp.f32 %v258_v45 }
 0x3cd   :  { %v1223_v46 = vpop.eup %1222 }
 0x3ce   :  { %v262_v49 = vmul.f32 %v1223_v46, %v160_v30 }
 0x431   :  { %v265_v47 = vpop.permute.xlu1 %264 }
 0x432   :  { %v267_v48 = vmul.f32 %v1223_v46, %v265_v47 }
 0x434   :  { %269 = vrot.lane.b32.xlu0 %v267_v48, %s1353_s8 }
 0x4a6   :  { %v270_v50 = vpop.permute.xlu0 %269 }
 0x4a7   :  { %v272_v51 = vadd.f32 %v270_v50, %v262_v49 }
 0x4a9   :  { %1224 = vtanh.f32 %v272_v51 }
 0x4b3   :  { %v1225_v52 = vpop.eup %1224 }
 0x4b4   :  { %275 = vrot.lane.b32.xlu1 %v1225_v52, %s1353_s8 }
 0x4b8   :  { %289 = vperm.xlu1 %1209, %v1001_v53  }
 0x526   :  { %v276_v54 = vpop.permute.xlu1 %275 }
 0x527   :  { %v278_v55 = vmul.f32 %v1223_v46, %v276_v54 }
 0x529   :  { %280 = vrot.lane.b32.xlu0 %v278_v55, %s1354_s13 }
 0x537   :  { %v290_v57 = vpop.permute.xlu1 %289 }
 0x538   :  { %v292_v58 = vmul.f32 %v1437_v13, %v290_v57 }
 0x53a   :  { %v293_v59 = vadd.f32 %v292_v58, %v1443_v15  ;;  %v1010_v58 = vld [vmem:[%s1585_s0 + $0xa] sm:$0x3] }
 0x59b   :  { %v281_v56 = vpop.permute.xlu0 %280 }
 0x59c   :  { %284 = vst.msk [vmem:[#allocation7 + $0x2] sm:$0x3] %vm39_vm0, %v281_v56  ;;  %1090 = vmatmul.mubr.msk.f32.vlgmr.msra.gmra.mrb[2].mxu0 %vm64_vm2, %v281_v56 }
 0x59d   :  { %1173 = vmatpush3.bf16.msra.mxu0 %v1411_v6  ;;  %1111 = vmatprep.mubr.msk.f32.mxu0 %vm1350_vm1, %v1351_v1 }
 0x59e   :  { %1174 = vmatprep.subr.bf16.mxu0 %v1349_v0 }
 0x5a1   :  { %1176 = vmatpush3.bf16.msra.mxu0 %v1417_v10 }
 0x5a2   :  { %1183 = vmatprep.subr.bf16.mxu0 %v1349_v0 }
 0x66f   :  { %v362_v60 = vpop.f32.mrb[2].mxu0 }
 0x670   :  { %v366_v61 = vadd.f32 %v362_v60, %v293_v59  ;;  %v1091_v62 = vpop.f32.mrb[3].mxu0 }
 0x672   :  { %1226 = vtanh.f32 %v366_v61  ;;  %v1003_v2 = vmul.f32 -1.442695, %v366_v61 }
 0x674   :  { %1228 = vpow2.f32 %v1003_v2 }
 0x67c   :  { %v1227_v63 = vpop.eup %1226 }
 0x67d   :  { %376 = vrot.lane.b32.xlu0 %v1227_v63, %s1353_s8 }
 0x67e   :  { %v1229_v3 = vpop.eup %1228 }
 0x67f   :  { %v370_v4 = vadd.f32 1.0, %v1229_v3 }
 0x681   :  { %1230 = vrcp.f32 %v370_v4 }
 0x68b   :  { %v1231_v5 = vpop.eup %1230 }
 0x68c   :  { %v374_v9 = vmul.f32 %v1231_v5, %v272_v51 }
 0x6ef   :  { %v377_v7 = vpop.permute.xlu0 %376 }
 0x6f0   :  { %v379_v8 = vmul.f32 %v1231_v5, %v377_v7 }
 0x6f2   :  { %381 = vrot.lane.b32.xlu1 %v379_v8, %s1353_s8 }
 0x764   :  { %v382_v11 = vpop.permute.xlu1 %381 }
 0x765   :  { %v384_v12 = vadd.f32 %v382_v11, %v374_v9 }
 0x767   :  { %1232 = vtanh.f32 %v384_v12 }
 0x771   :  { %v1233_v14 = vpop.eup %1232 }
 0x772   :  { %387 = vrot.lane.b32.xlu0 %v1233_v14, %s1353_s8 }
 0x776   :  { %401 = vperm.xlu0 %1208, %v1004_v16  }
 0x7e4   :  { %v388_v17 = vpop.permute.xlu0 %387 }
 0x7e5   :  { %v390_v18 = vmul.f32 %v1231_v5, %v388_v17  ;;  %v1013_v17 = vld [vmem:[%s1585_s0 + $0xc] sm:$0x3] }
 0x7e7   :  { %392 = vrot.lane.b32.xlu1 %v390_v18, %s1354_s13 }
 0x7f5   :  { %v402_v20 = vpop.permute.xlu0 %401 }
 0x7f6   :  { %v404_v21 = vmul.f32 %v1437_v13, %v402_v20 }
 0x7f8   :  { %v405_v22 = vadd.f32 %v404_v21, %v1443_v15 }
 0x859   :  { %v393_v19 = vpop.permute.xlu1 %392 }
 0x85a   :  { %396 = vst.msk [vmem:[#allocation7 + $0x4] sm:$0x3] %vm39_vm0, %v393_v19  ;;  %1101 = vmatmul.mubr.msk.f32.vlgmr.msra.gmra.mrb[2].mxu1 %vm64_vm2, %v393_v19 }
 0x85b   :  { %1179 = vmatpush3.bf16.msra.mxu1 %v1411_v6  ;;  %1122 = vmatprep.mubr.msk.f32.mxu1 %vm1350_vm1, %v1351_v1 }
 0x85c   :  { %1180 = vmatprep.subr.bf16.mxu1 %v1349_v0 }
 0x85f   :  { %1182 = vmatpush3.bf16.msra.mxu1 %v1417_v10 }
 0x860   :  { %1189 = vmatprep.subr.bf16.mxu1 %v1349_v0 }
 0x92d   :  { %v474_v23 = vpop.f32.mrb[2].mxu1 }
 0x92e   :  { %v478_v24 = vadd.f32 %v474_v23, %v405_v22  ;;  %v1102_v25 = vpop.f32.mrb[3].mxu1 }
 0x930   :  { %1234 = vtanh.f32 %v478_v24  ;;  %v1006_v27 = vmul.f32 -1.442695, %v478_v24 }
 0x932   :  { %1236 = vpow2.f32 %v1006_v27 }
 0x93a   :  { %v1235_v26 = vpop.eup %1234 }
 0x93b   :  { %488 = vrot.lane.b32.xlu1 %v1235_v26, %s1353_s8 }
 0x93c   :  { %v1237_v28 = vpop.eup %1236 }
 0x93d   :  { %v482_v29 = vadd.f32 1.0, %v1237_v28 }
 0x93f   :  { %1238 = vrcp.f32 %v482_v29 }
 0x949   :  { %v1239_v30 = vpop.eup %1238 }
 0x94a   :  { %v486_v33 = vmul.f32 %v1239_v30, %v384_v12 }
 0x9ad   :  { %v489_v31 = vpop.permute.xlu1 %488 }
 0x9ae   :  { %v491_v32 = vmul.f32 %v1239_v30, %v489_v31 }
 0x9b0   :  { %493 = vrot.lane.b32.xlu0 %v491_v32, %s1353_s8 }
 0xa22   :  { %v494_v34 = vpop.permute.xlu0 %493 }
 0xa23   :  { %v496_v35 = vadd.f32 %v494_v34, %v486_v33 }
 0xa25   :  { %1240 = vtanh.f32 %v496_v35 }
 0xa2f   :  { %v1241_v36 = vpop.eup %1240 }
 0xa30   :  { %499 = vrot.lane.b32.xlu1 %v1241_v36, %s1353_s8 }
 0xa34   :  { %513 = vperm.xlu1 %1209, %v1007_v37  }
 0xaa2   :  { %v500_v38 = vpop.permute.xlu1 %499 }
 0xaa3   :  { %v502_v39 = vmul.f32 %v1239_v30, %v500_v38  ;;  %v1016_v38 = vld [vmem:[%s1585_s0 + $0xe] sm:$0x3]  ;;  %s1355_s0 = smov 96  }
 0xaa5   :  { %504 = vrot.lane.b32.xlu0 %v502_v39, %s1354_s13 }
 0xab3   :  { %v514_v41 = vpop.permute.xlu1 %513 }
 0xab4   :  { %v516_v42 = vmul.f32 %v1437_v13, %v514_v41 }
 0xab6   :  { %v517_v43 = vadd.f32 %v516_v42, %v1443_v15 }
 0xb17   :  { %v505_v40 = vpop.permute.xlu0 %504 }
 0xb18   :  { %508 = vst.msk [vmem:[#allocation7 + $0x6] sm:$0x3] %vm39_vm0, %v505_v40  ;;  %1112 = vmatmul.mubr.msk.f32.vlgmr.msra.gmra.mrb[4].mxu0 %vm64_vm2, %v505_v40 }
 0xb19   :  { %1185 = vmatpush3.bf16.msra.mxu0 %v1411_v6  ;;  %1133 = vmatprep.mubr.msk.f32.mxu0 %vm1350_vm1, %v1351_v1 }
 0xb1a   :  { %1186 = vmatprep.subr.bf16.mxu0 %v1349_v0 }
 0xb1d   :  { %1188 = vmatpush3.bf16.msra.mxu0 %v1417_v10 }
 0xbeb   :  { %v586_v44 = vpop.f32.mrb[4].mxu0 }
 0xbec   :  { %v590_v45 = vadd.f32 %v586_v44, %v517_v43  ;;  %v1113_v46 = vpop.f32.mrb[5].mxu0 }
 0xbee   :  { %1242 = vtanh.f32 %v590_v45  ;;  %v1009_v48 = vmul.f32 -1.442695, %v590_v45 }
 0xbf0   :  { %1244 = vpow2.f32 %v1009_v48 }
 0xbf8   :  { %v1243_v47 = vpop.eup %1242 }
 0xbf9   :  { %600 = vrot.lane.b32.xlu0 %v1243_v47, %s1353_s8 }
 0xbfa   :  { %v1245_v49 = vpop.eup %1244 }
 0xbfb   :  { %v594_v50 = vadd.f32 1.0, %v1245_v49 }
 0xbfd   :  { %1246 = vrcp.f32 %v594_v50 }
 0xc07   :  { %v1247_v51 = vpop.eup %1246 }
 0xc08   :  { %v598_v54 = vmul.f32 %v1247_v51, %v496_v35 }
 0xc6b   :  { %v601_v52 = vpop.permute.xlu0 %600 }
 0xc6c   :  { %v603_v53 = vmul.f32 %v1247_v51, %v601_v52 }
 0xc6e   :  { %605 = vrot.lane.b32.xlu1 %v603_v53, %s1353_s8 }
 0xce0   :  { %v606_v55 = vpop.permute.xlu1 %605 }
 0xce1   :  { %v608_v56 = vadd.f32 %v606_v55, %v598_v54 }
 0xce3   :  { %1248 = vtanh.f32 %v608_v56 }
 0xced   :  { %v1249_v57 = vpop.eup %1248 }
 0xcee   :  { %611 = vrot.lane.b32.xlu0 %v1249_v57, %s1353_s8 }
 0xcf2   :  { %625 = vperm.xlu0 %1208, %v1010_v58  }
 0xd60   :  { %v612_v59 = vpop.permute.xlu0 %611 }
 0xd61   :  { %v614_v60 = vmul.f32 %v1247_v51, %v612_v59 }
 0xd63   :  { %616 = vrot.lane.b32.xlu1 %v614_v60, %s1354_s13 }
 0xd71   :  { %v626_v62 = vpop.permute.xlu0 %625 }
 0xd72   :  { %v628_v63 = vmul.f32 %v1437_v13, %v626_v62 }
 0xd74   :  { %v629_v2 = vadd.f32 %v628_v63, %v1443_v15 }
 0xdd5   :  { %v617_v61 = vpop.permute.xlu1 %616 }
 0xdd6   :  { %620 = vst.msk [vmem:[#allocation7 + $0x8] sm:$0x3] %vm39_vm0, %v617_v61  ;;  %1123 = vmatmul.mubr.msk.f32.vlgmr.msra.gmra.mrb[4].mxu1 %vm64_vm2, %v617_v61 }
 0xdd7   :  { %1191 = vmatpush3.bf16.msra.mxu1 %v1411_v6  ;;  %1144 = vmatprep.mubr.msk.f32.mxu1 %vm1350_vm1, %v1351_v1 }
 0xdd8   :  { %1192 = vmatprep.subr.bf16.mxu1 %v1349_v0 }
 0xddb   :  { %1194 = vmatpush3.bf16.msra.mxu1 %v1417_v10 }
 0xea9   :  { %v698_v3 = vpop.f32.mrb[4].mxu1 }
 0xeaa   :  { %v702_v4 = vadd.f32 %v698_v3, %v629_v2  ;;  %v1124_v5 = vpop.f32.mrb[5].mxu1 }
 0xeac   :  { %1250 = vtanh.f32 %v702_v4  ;;  %v1012_v6 = vmul.f32 -1.442695, %v702_v4 }
 0xeae   :  { %1252 = vpow2.f32 %v1012_v6 }
 0xeb6   :  { %v1251_v7 = vpop.eup %1250 }
 0xeb7   :  { %712 = vrot.lane.b32.xlu1 %v1251_v7, %s1353_s8 }
 0xeb8   :  { %v1253_v8 = vpop.eup %1252 }
 0xeb9   :  { %v706_v1 = vadd.f32 1.0, %v1253_v8 }
 0xebb   :  { %1254 = vrcp.f32 %v706_v1 }
 0xec5   :  { %v1255_v0 = vpop.eup %1254 }
 0xec6   :  { %v710_v11 = vmul.f32 %v1255_v0, %v608_v56 }
 0xf29   :  { %v713_v9 = vpop.permute.xlu1 %712 }
 0xf2a   :  { %v715_v10 = vmul.f32 %v1255_v0, %v713_v9 }
 0xf2c   :  { %717 = vrot.lane.b32.xlu0 %v715_v10, %s1353_s8 }
 0xf9e   :  { %v718_v12 = vpop.permute.xlu0 %717 }
 0xf9f   :  { %v720_v14 = vadd.f32 %v718_v12, %v710_v11 }
 0xfa1   :  { %1256 = vtanh.f32 %v720_v14 }
 0xfab   :  { %v1257_v16 = vpop.eup %1256 }
 0xfac   :  { %723 = vrot.lane.b32.xlu1 %v1257_v16, %s1353_s8 }
 0xfb0   :  { %737 = vperm.xlu1 %1209, %v1013_v17  }
0x101e   :  { %v724_v18 = vpop.permute.xlu1 %723 }
0x101f   :  { %v726_v19 = vmul.f32 %v1255_v0, %v724_v18 }
0x1021   :  { %728 = vrot.lane.b32.xlu0 %v726_v19, %s1354_s13 }
0x102f   :  { %v738_v21 = vpop.permute.xlu1 %737 }
0x1030   :  { %v740_v22 = vmul.f32 %v1437_v13, %v738_v21 }
0x1032   :  { %v741_v23 = vadd.f32 %v740_v22, %v1443_v15 }
0x1093   :  { %v729_v20 = vpop.permute.xlu0 %728 }
0x1094   :  { %732 = vst.msk [vmem:[#allocation7 + $0xa] sm:$0x3] %vm39_vm0, %v729_v20  ;;  %1134 = vmatmul.mubr.msk.f32.vlgmr.msra.gmra.mrb[6].mxu0 %vm64_vm2, %v729_v20 }
0x1167   :  { %v810_v24 = vpop.f32.mrb[6].mxu0 }
0x1168   :  { %v814_v25 = vadd.f32 %v810_v24, %v741_v23  ;;  %v1135_v26 = vpop.f32.mrb[7].mxu0 }
0x116a   :  { %1258 = vtanh.f32 %v814_v25  ;;  %v1015_v28 = vmul.f32 -1.442695, %v814_v25 }
0x116c   :  { %1260 = vpow2.f32 %v1015_v28 }
0x1174   :  { %v1259_v27 = vpop.eup %1258 }
0x1175   :  { %824 = vrot.lane.b32.xlu0 %v1259_v27, %s1353_s8 }
0x1176   :  { %v1261_v29 = vpop.eup %1260 }
0x1177   :  { %v818_v30 = vadd.f32 1.0, %v1261_v29 }
0x1179   :  { %1262 = vrcp.f32 %v818_v30 }
0x1183   :  { %v1263_v31 = vpop.eup %1262 }
0x1184   :  { %v822_v34 = vmul.f32 %v1263_v31, %v720_v14 }
0x11e7   :  { %v825_v32 = vpop.permute.xlu0 %824 }
0x11e8   :  { %v827_v33 = vmul.f32 %v1263_v31, %v825_v32 }
0x11ea   :  { %829 = vrot.lane.b32.xlu1 %v827_v33, %s1353_s8 }
0x125c   :  { %v830_v35 = vpop.permute.xlu1 %829 }
0x125d   :  { %v832_v36 = vadd.f32 %v830_v35, %v822_v34 }
0x125f   :  { %1264 = vtanh.f32 %v832_v36 }
0x1269   :  { %v1265_v37 = vpop.eup %1264 }
0x126a   :  { %835 = vrot.lane.b32.xlu0 %v1265_v37, %s1353_s8 }
0x126e   :  { %849 = vperm.xlu0 %1208, %v1016_v38  }
0x12dc   :  { %v836_v39 = vpop.permute.xlu0 %835 }
0x12dd   :  { %v838_v40 = vmul.f32 %v1263_v31, %v836_v39 }
0x12df   :  { %840 = vrot.lane.b32.xlu1 %v838_v40, %s1354_s13 }
0x12ed   :  { %v850_v42 = vpop.permute.xlu0 %849 }
0x12ee   :  { %v852_v43 = vmul.f32 %v1437_v13, %v850_v42 }
0x12f0   :  { %v853_v44 = vadd.f32 %v852_v43, %v1443_v15 }
0x1351   :  { %v841_v41 = vpop.permute.xlu1 %840 }
0x1352   :  { %844 = vst.msk [vmem:[#allocation7 + $0xc] sm:$0x3] %vm39_vm0, %v841_v41  ;;  %1145 = vmatmul.mubr.msk.f32.vlgmr.msra.gmra.mrb[6].mxu1 %vm64_vm2, %v841_v41 }
0x1425   :  { %v922_v45 = vpop.f32.mrb[6].mxu1 }
0x1426   :  { %v926_v46 = vadd.f32 %v922_v45, %v853_v44  ;;  %v1146_v47 = vpop.f32.mrb[7].mxu1 }
0x1428   :  { %1266 = vtanh.f32 %v926_v46  ;;  %v1018_v49 = vmul.f32 -1.442695, %v926_v46 }
0x142a   :  { %1268 = vpow2.f32 %v1018_v49 }
0x1432   :  { %v1267_v48 = vpop.eup %1266 }
0x1433   :  { %936 = vrot.lane.b32.xlu1 %v1267_v48, %s1353_s8 }
0x1434   :  { %v1269_v50 = vpop.eup %1268 }
0x1435   :  { %v930_v51 = vadd.f32 1.0, %v1269_v50 }
0x1437   :  { %1270 = vrcp.f32 %v930_v51 }
0x1441   :  { %v1271_v52 = vpop.eup %1270 }
0x1442   :  { %v934_v13 = vmul.f32 %v1271_v52, %v832_v36 }
0x14a5   :  { %v937_v53 = vpop.permute.xlu1 %936 }
0x14a6   :  { %v939_v54 = vmul.f32 %v1271_v52, %v937_v53 }
0x14a8   :  { %941 = vrot.lane.b32.xlu0 %v939_v54, %s1353_s8 }
0x151a   :  { %v942_v55 = vpop.permute.xlu0 %941 }
0x151b   :  { %v944_v15 = vadd.f32 %v942_v55, %v934_v13 }
0x151d   :  { %1272 = vtanh.f32 %v944_v15 }
0x1527   :  { %v1273_v56 = vpop.eup %1272 }
0x1528   :  { %947 = vrot.lane.b32.xlu1 %v1273_v56, %s1353_s8 }
0x152c   :  { %959 = vrot.lane.b32.xlu1 %v944_v15, %s1355_s0 }
0x159a   :  { %v948_v57 = vpop.permute.xlu1 %947 }
0x159b   :  { %v950_v58 = vmul.f32 %v1271_v52, %v948_v57 }
0x159d   :  { %952 = vrot.lane.b32.xlu0 %v950_v58, %s1354_s13 }
0x159e   :  { %v960_v59 = vpop.permute.xlu1 %959 }
0x159f   :  { %962 = vst.msk [vmem:[#allocation3] sm:$0x3] %vm39_vm0, %v960_v59  ;;  %963 = vst.msk [vmem:[#allocation8] sm:$0x3] %vm39_vm0, %v960_v59 }
0x15a0   :  { %1307 = shalt.err (!%p1304_p12)
}
0x15a1   :  { %s1308_s6 = scalar_lea.hbm %s1590_s5, 32 }
0x15a2   :  { %p1309_p13 = scmp.ne.s32.totalorder %s1590_s5, %s1308_s6  ;;  %p1312_p0 = scmp.lt.u32.totalorder %s1308_s6, %s1590_s5 }
0x15a4   :  { %p1314_p1 = pnand %p1312_p0, %p1309_p13 }
0x15a6   :  { %1317 = shalt.err (!%p1314_p1)
}
0x15a7   :  { %985 = dma.vmem_to_hbm [thread:$0]  %s983_s27, 32, %s1590_s5, [#allocation9]  }
0x15a8   :  { %s1357_s1 = smov [#allocation7]  }
0x15a9   :  { %s969_s2 = sshll.u32 %s1357_s1, 4  ;;  %s970_s2 = int_to_ptr.vmem [resolvable:$true] %s969_s2 }
0x15aa   :  { %s1318_s13 = scalar_lea.vmem %s970_s2, 256  ;;  %p1323_p3 = scmp.lt.s32.totalorder %s970_s2, %s970_s2 }
0x15ab   :  { %p1319_p2 = scmp.ne.s32.totalorder %s970_s2, %s1318_s13  ;;  %p1324_p4 = scmp.lt.s32.totalorder %s1318_s13, %s1318_s13 }
0x15ad   :  { %p1325_p5 = por %p1324_p4, %p1323_p3 }
0x15af   :  { %p1326_p6 = pnand %p1325_p5, %p1319_p2 }
0x160f   :  { %v953_v60 = vpop.permute.xlu0 %952 }
0x1610   :  { %956 = vst.msk [vmem:[#allocation7 + $0xe] sm:$0x3] %vm39_vm0, %v953_v60  ;;  %957 = vst.msk [vmem:[#allocation2] sm:$0x3] %vm39_vm0, %v953_v60 }
0x1611   :  { %1329 = shalt.err (!%p1326_p6)
}
0x1612   :  { %s1330_s16 = scalar_lea.hbm %s1589_s4, 256 }
0x1613   :  { %p1331_p7 = scmp.ne.s32.totalorder %s1589_s4, %s1330_s16  ;;  %p1334_p8 = scmp.lt.u32.totalorder %s1330_s16, %s1589_s4 }
0x1615   :  { %p1336_p9 = pnand %p1334_p8, %p1331_p7 }
0x1617   :  { %1339 = shalt.err (!%p1336_p9)
}
0x1618   :  { %s1358_s20 = smov 2  }
0x1619   :  { %975 = dma.vmem_to_hbm [thread:$0]  %s970_s2, 256, %s1589_s4, [#allocation6], %s1353_s8, %s1353_s8, %s1358_s20  }
0x161a   :  { %1342 = dma.done.wait [#allocation6], 256  }
0x161b   :  { %1343 = vsyncadd [#allocation6], 4294967040 }
0x161c   :  { %1344 = dma.done.wait [#allocation9], 32  }
0x161d   :  { %1345 = vsyncadd [#allocation9], 4294967264 }
0x161e   :  { %992 = vsyncpa [#allocation5], 1 }
0x161f   :  { %993 = vsyncpa [#allocation6], 1 }
0x1620   :  { %994 = vsyncpa [#allocation9], 1 }

</bundles_post_ra>
